<compile_context>
chip_gen: v7x
topology: tpu7x:2x2x1
jax: 0.10.0
libtpu: 0.0.40
codegen_flags: <defaults>
</compile_context>

<pallas_src>
import jax
import jax.numpy as jnp
from jax.experimental import pallas as pl
from jax.experimental.pallas import tpu as pltpu


def _round_up(a: int, b: int) -> int:
    return ((a + b - 1) // b) * b


def squash(x, in_min, in_max, out_min, out_max, *, lane=512, block_rows=1024):
    """Apply y = (x - in_min) / (in_max - in_min) * (out_max - out_min) + out_min."""
    in_scale = float(in_max) - float(in_min)
    out_scale = float(out_max) - float(out_min)
    ratio = out_scale / in_scale          # fold divide+multiply into one mul
    in_min_f = float(in_min)
    out_min_f = float(out_min)

    orig_shape = x.shape
    n = x.size

    # Lane-dense flatten: (N,) -> (rows, lane) with lane a multiple of 128.
    flat = x.reshape(-1)
    rows = -(-n // lane)                              # ceil(n / lane)
    br = min(block_rows, _round_up(max(rows, 1), 8))  # sublane-aligned block
    rows_p = _round_up(rows, br)
    total = rows_p * lane
    if total != n:
        flat = jnp.pad(flat, (0, total - n))
    x2 = flat.reshape(rows_p, lane)

    def kernel(x_ref, o_ref):
        xv = x_ref[...].astype(jnp.float32)
        o_ref[...] = ((xv - in_min_f) * ratio + out_min_f).astype(o_ref.dtype)

    out2 = pl.pallas_call(
        kernel,
        out_shape=jax.ShapeDtypeStruct((rows_p, lane), x.dtype),
        grid=(rows_p // br,),
        in_specs=[pl.BlockSpec((br, lane), lambda i: (i, 0))],
        out_specs=pl.BlockSpec((br, lane), lambda i: (i, 0)),
        compiler_params=pltpu.CompilerParams(
            dimension_semantics=("parallel",),
        ),
    )(x2)

    return out2.reshape(-1)[:n].reshape(orig_shape)


if __name__ == "__main__":
    key = jax.random.PRNGKey(0)

    # Small NCHW-shaped example: batch=2, channels=4, spatial=16x16.
    shape = (2, 4, 16, 16)
    x = jax.random.uniform(key, shape, dtype=jnp.float32, minval=-1.0, maxval=1.0)

    in_min, in_max, out_min, out_max = -1.0, 1.0, 0.0, 10.0

    out = squash(x, in_min, in_max, out_min, out_max)
    out = jax.block_until_ready(out)

    ref = (x - in_min) / (in_max - in_min) * (out_max - out_min) + out_min

    assert out.shape == shape
    assert out.dtype == x.dtype
    assert bool(jnp.allclose(out, ref, rtol=1e-5, atol=1e-5))
    assert bool(jnp.all(jnp.isfinite(out)))

    print("KERNEL_OK")
</pallas_src>

<mosaic_0001>
module attributes {stable_mosaic.version = 11 : i64} {
  func.func @kernel(%arg0: i32, %arg1: memref<8x512xf32, #tpu.memory_space<vmem>>, %arg2: memref<8x512xf32, #tpu.memory_space<vmem>>) attributes {dimension_semantics = [#tpu.dimension_semantics<parallel>], iteration_bounds = array<i64: 1>, scalar_prefetch = 0 : i64, scratch_operands = 0 : i64, tpu.core_type = #tpu.core_type<tc>, window_params = [{transform_indices = @transform_0, window_bounds = array<i64: 8, 512>}, {transform_indices = @transform_1, window_bounds = array<i64: 8, 512>}]} {
    %c0 = arith.constant 0 : index
    %c0_0 = arith.constant 0 : index
    %0 = vector.load %arg1[%c0, %c0_0] : memref<8x512xf32, #tpu.memory_space<vmem>>, vector<8x512xf32>
    %cst = arith.constant -1.000000e+00 : f32
    %1 = vector.broadcast %cst : f32 to vector<8x512xf32>
    %2 = arith.subf %0, %1 : vector<8x512xf32>
    %cst_1 = arith.constant 5.000000e+00 : f32
    %3 = vector.broadcast %cst_1 : f32 to vector<8x512xf32>
    %4 = arith.mulf %2, %3 : vector<8x512xf32>
    %cst_2 = arith.constant 0.000000e+00 : f32
    %5 = vector.broadcast %cst_2 : f32 to vector<8x512xf32>
    %6 = arith.addf %4, %5 : vector<8x512xf32>
    %c0_3 = arith.constant 0 : index
    %c0_4 = arith.constant 0 : index
    %7 = vector.load %arg2[%c0_3, %c0_4] : memref<8x512xf32, #tpu.memory_space<vmem>>, vector<8x512xf32>
    tpu.vector_store %arg2[%c0_3, %c0_4], %6 {strides = array<i32>} : memref<8x512xf32, #tpu.memory_space<vmem>>, vector<8x512xf32>,
    return
  }
  func.func @transform_0(%arg0: i32) -> (i32, i32) {
    %c0_i32 = arith.constant 0 : i32
    %c0_i32_0 = arith.constant 0 : i32
    return %arg0, %c0_i32 : i32, i32
  }
  func.func @transform_1(%arg0: i32) -> (i32, i32) {
    %c0_i32 = arith.constant 0 : i32
    %c0_i32_0 = arith.constant 0 : i32
    return %arg0, %c0_i32 : i32, i32
  }
}

</mosaic_0001>

<bundles_post_ra>
// kernel: tpu_custom_call.1
= control target key start
LH: loop header
LB: loop body
LE: loop exit
PB: predicated region body
PF: predicated region fallthrough
CT: control target
= control target key end

     0   :  { %6 = vsyncpa [#allocation3], 0  ;;  %s146_s0 = inlined_call_operand.hbm [shape: f32[8,512], index: 0, kind: input, shape index: {}]   ;;  %s147_s1 = inlined_call_operand.hbm [shape: f32[8,512], index: 1, kind: output, shape index: {}]  }
   0x1   :  { %7 = vsyncpa [#allocation4], 0  ;;  %s110_s6 = smov [#allocation2]   ;;  %s62_s10 = scalar_lea.hbm %s146_s0, 512 }
   0x2   :  { %s14_s7 = sshll.u32 %s110_s6, 4  ;;  %p63_p0 = scmp.ne.s32.totalorder %s146_s0, %s62_s10  ;;  %s15_s7 = int_to_ptr.vmem [resolvable:$true] %s14_s7 }
   0x3   :  { %p66_p1 = scmp.lt.u32.totalorder %s62_s10, %s146_s0 }
   0x5   :  { %p68_p2 = pnand %p66_p1, %p63_p0 }
   0x7   :  { %71 = shalt.err (!%p68_p2)
}
   0x8   :  { %s72_s15 = scalar_lea.vmem %s15_s7, 512  ;;  %p77_p4 = scmp.lt.s32.totalorder %s15_s7, %s15_s7 }
   0x9   :  { %p73_p3 = scmp.ne.s32.totalorder %s15_s7, %s72_s15  ;;  %p78_p5 = scmp.lt.s32.totalorder %s72_s15, %s72_s15 }
   0xb   :  { %p79_p6 = por %p78_p5, %p77_p4 }
   0xd   :  { %p80_p7 = pnand %p79_p6, %p73_p3 }
   0xf   :  { %83 = shalt.err (!%p80_p7)
}
  0x10   :  { %17 = dma.hbm_to_vmem [thread:$0]  %s146_s0, 512, %s15_s7, [#allocation3]  }
  0x11   :  { %106 = dma.done.wait [#allocation3], 512  }
  0x12   :  { %107 = vsyncadd [#allocation3], 4294966784  ;;  %v21_v0 = vld [vmem:[#allocation2] sm:$0xff]  ;;  %v22_v1 = vld [vmem:[#allocation2 + $0x8] sm:$0xff]  ;;  %s111_s18 = smov [#allocation5]  }
  0x13   :  { %v23_v2 = vld [vmem:[#allocation2 + $0x10] sm:$0xff]  ;;  %v56_v3 = vadd.f32 1.0, %v21_v0  ;;  %v57_v4 = vadd.f32 1.0, %v22_v1  ;;  %v24_v6 = vld [vmem:[#allocation2 + $0x18] sm:$0xff]  ;;  %s47_s19 = sshll.u32 %s111_s18, 4  ;;  %s48_s19 = int_to_ptr.vmem [resolvable:$true] %s47_s19 }
  0x14   :  { %v58_v5 = vadd.f32 1.0, %v23_v2  ;;  %v59_v7 = vadd.f32 1.0, %v24_v6  ;;  %s84_s0 = scalar_lea.vmem %s48_s19, 512  ;;  %p89_p9 = scmp.lt.s32.totalorder %s48_s19, %s48_s19 }
  0x15   :  { %v29_v8 = vmul.f32 5.0, %v56_v3  ;;  %v30_v9 = vmul.f32 5.0, %v57_v4  ;;  %p85_p8 = scmp.ne.s32.totalorder %s48_s19, %s84_s0  ;;  %p90_p10 = scmp.lt.s32.totalorder %s84_s0, %s84_s0 }
  0x16   :  { %v31_v10 = vmul.f32 5.0, %v58_v5  ;;  %v32_v11 = vmul.f32 5.0, %v59_v7 }
  0x17   :  { %37 = vst [vmem:[#allocation5] sm:$0xff] %v29_v8  ;;  %38 = vst [vmem:[#allocation5 + $0x8] sm:$0xff] %v30_v9  ;;  %p91_p11 = por %p90_p10, %p89_p9 }
  0x18   :  { %39 = vst [vmem:[#allocation5 + $0x10] sm:$0xff] %v31_v10  ;;  %40 = vst [vmem:[#allocation5 + $0x18] sm:$0xff] %v32_v11 }
  0x19   :  { %p92_p12 = pnand %p91_p11, %p85_p8 }
  0x1b   :  { %95 = shalt.err (!%p92_p12)
}
  0x1c   :  { %s96_s22 = scalar_lea.hbm %s147_s1, 512 }
  0x1d   :  { %p97_p13 = scmp.ne.s32.totalorder %s147_s1, %s96_s22  ;;  %p100_p0 = scmp.lt.u32.totalorder %s96_s22, %s147_s1 }
  0x1f   :  { %p102_p1 = pnand %p100_p0, %p97_p13 }
  0x21   :  { %105 = shalt.err (!%p102_p1)
}
  0x22   :  { %50 = dma.vmem_to_hbm [thread:$0]  %s48_s19, 512, %s147_s1, [#allocation4]  }
  0x23   :  { %108 = dma.done.wait [#allocation4], 512  }
  0x24   :  { %109 = vsyncadd [#allocation4], 4294966784 }
  0x25   :  { %54 = vsyncpa [#allocation3], 1 }
  0x26   :  { %55 = vsyncpa [#allocation4], 1 }

</bundles_post_ra>
